<compile_context>
chip_gen: v7x
topology: tpu7x:2x2x1
jax: 0.10.0
libtpu: 0.0.40
codegen_flags: <defaults>
</compile_context>

<pallas_src>
import math

import jax
import jax.numpy as jnp
from jax.experimental import pallas as pl
from jax.experimental.pallas import tpu as pltpu


# ----------------------------- Pallas kernel ------------------------------ #

def _round_up(x, m):
    return ((x + m - 1) // m) * m


def _vmem_capacity_bytes(default=64 << 20):
    """Best-effort physical VMEM query (v7x: 64 MiB, v5e/v6e: 128 MiB)."""
    try:
        info = pltpu.get_tpu_info()
        cap = getattr(info, "vmem_capacity_bytes", None)
        if cap:
            return int(cap)
    except Exception:
        pass
    return default


def _make_combine_kernel(n_tot, rhs_dtype):
    """kernel(idx_ref, imgs_ref, basis_ref, out_ref)

    idx_ref  : (n_pad, 1) int32 VMEM   selected rows (-1 in pad rows)
    imgs_ref : (n_tot, K)  f32 VMEM    coefficient embedding table (resident)
    basis_ref: (K, tile_cols)          one lane-dense column tile of basis
    out_ref  : (n_pad, tile_cols)
    """

    def kernel(idx_ref, imgs_ref, basis_ref, out_ref):
        n_pad = idx_ref.shape[0]
        # One-hot gather on the MXU: (n_pad, n_tot) @ (n_tot, K) -> (n_pad, K).
        # Exact (0/1 weights pick exact rows); pad rows (idx == -1) come out 0.
        cols = jax.lax.broadcasted_iota(jnp.int32, (n_pad, n_tot), 1)
        one_hot = (idx_ref[...] == cols).astype(jnp.float32)
        coef = jnp.dot(one_hot, imgs_ref[...],
                       preferred_element_type=jnp.float32)
        if coef.dtype != rhs_dtype:
            coef = coef.astype(rhs_dtype)          # bf16 basis path
        out_ref[...] = jnp.dot(coef, basis_ref[...],
                               preferred_element_type=jnp.float32
                               ).astype(out_ref.dtype)

    return kernel


def combine_basis_pallas(imgs_table, basis_flat, indices,
                         *, basis_compute_dtype=jnp.float32):
    """Fused  gather(imgs_table, indices) @ basis_flat  ->  (N_sel, D) f32.

    imgs_table : (n_tot, n_basis)  coefficient embedding weight
    basis_flat : (n_basis, D)      flattened basis embedding weight (C*H*W)
    indices    : (N_sel,) int      selected coefficient rows

    basis_compute_dtype=jnp.bfloat16 halves the dominant HBM->VMEM transfer
    (biggest win on v5e) at ~1e-3 output accuracy; default keeps exact f32.
    """
    n_tot, k = imgs_table.shape
    kb, d = basis_flat.shape
    assert k == kb, "coefficient / basis inner dims must match"
    n_sel = int(indices.shape[0])

    # Guarded casts: no-ops (no extra XLA converts) when already the target.
    if imgs_table.dtype != jnp.float32:
        imgs_table = imgs_table.astype(jnp.float32)
    if basis_flat.dtype != basis_compute_dtype:
        basis_flat = basis_flat.astype(basis_compute_dtype)
    if indices.dtype != jnp.int32:
        indices = indices.astype(jnp.int32)
    basis_itemsize = jnp.dtype(basis_compute_dtype).itemsize

    # Lane-dense output: pad D to a multiple of 128 only if needed.
    d_pad = _round_up(d, 128)
    if d_pad != d:
        basis_flat = jnp.pad(basis_flat, ((0, 0), (0, d_pad - d)))

    # Rows padded to the 8-sublane quantum; pad rows get index -1 so their
    # one-hot row (and therefore their output row) is all zero.
    n_pad = _round_up(n_sel, 8)
    idx_col = jnp.full((n_pad,), -1, jnp.int32).at[:n_sel].set(indices)
    idx_col = idx_col.reshape(n_pad, 1)

    # ---- VMEM budgeting (generation-aware) --------------------------------
    vmem_cap = _vmem_capacity_bytes()
    # Resident blocks (BlockSpec double-buffers by default): coeff table + idx.
    resident_bytes = 2 * (n_tot * k * 4) + 2 * (n_pad * 128 * 4)
    budget = min(vmem_cap // 2, 48 << 20)              # ~32 MiB on v7x, 48 MiB on v5e/v6e
    avail = max(budget - resident_bytes, 4 << 20)
    bytes_per_col = 2 * (k * basis_itemsize + n_pad * 4)   # basis + out, dbl-buffered
    cap_cols = max(128, (avail // bytes_per_col) // 128 * 128)

    # ---- Column tiling: biggest tile that fits; prefer an even number of
    # tiles dividing d_pad so megacore ("parallel") sharding stays balanced. --
    if d_pad <= cap_cols:
        tile_cols, n_tiles = d_pad, 1
    else:
        n128 = d_pad // 128
        max_c = max(1, cap_cols // 128)
        divisors = [c for c in range(1, n128 + 1)
                    if n128 % c == 0 and c <= max_c]
        best = None
        for c in sorted(divisors, reverse=True):
            if (n128 // c) % 2 == 0:
                best = c
                break
        if best is None:
            best = max(divisors)
        tile_cols = best * 128
        n_tiles = n128 // best

    # Explicit scoped-VMEM limit (>= estimated use, <= physical capacity).
    usage = resident_bytes + 2 * tile_cols * (k * basis_itemsize + n_pad * 4)
    vmem_limit = max(32 << 20, int(usage * 1.5) + (2 << 20))
    vmem_limit = min(vmem_limit, max(vmem_cap - (2 << 20), 32 << 20))

    kernel = _make_combine_kernel(n_tot, basis_compute_dtype)
    out = pl.pallas_call(
        kernel,
        out_shape=jax.ShapeDtypeStruct((n_pad, d_pad), jnp.float32),
        grid_spec=pltpu.PrefetchScalarGridSpec(
            num_scalar_prefetch=0,
            grid=(n_tiles,),
            in_specs=[
                # selected-row indices as a tiny resident VMEM column vector
                pl.BlockSpec((n_pad, 1), lambda j: (0, 0)),
                # full (small) coefficient table, resident across the grid
                pl.BlockSpec((n_tot, k), lambda j: (0, 0)),
                # one lane-dense column tile of the flattened basis
                pl.BlockSpec((k, tile_cols), lambda j: (0, j)),
            ],
            out_specs=pl.BlockSpec((n_pad, tile_cols), lambda j: (0, j)),
        ),
        compiler_params=pltpu.CompilerParams(
            dimension_semantics=("parallel",),
            vmem_limit_bytes=int(vmem_limit),
        ),
    )(idx_col, imgs_table, basis_flat)

    # Crop only when padding actually happened (avoids an extra HBM copy in
    # the common aligned case).
    if n_pad != n_sel or d_pad != d:
        out = out[:n_sel, :d]
    return out


# --------------------------- Module (JAX glue) ----------------------------- #

def xavier_uniform(key, shape):
    # nn.init.xavier_uniform_ on a 2-D weight: fan_out, fan_in = shape
    fan_out, fan_in = shape
    bound = math.sqrt(6.0 / (fan_in + fan_out))
    return jax.random.uniform(key, shape, jnp.float32, -bound, bound)


def init_net(key, ipc, channel, im_size, num_classes, n_basis):
    kb, ki = jax.random.split(key)
    d_img = channel * im_size[0] * im_size[1]
    params = {
        "basis": xavier_uniform(kb, (n_basis, d_img)),             # nn.Embedding(n_basis, C*H*W)
        "imgs": xavier_uniform(ki, (ipc * num_classes, n_basis)),  # nn.Embedding(ipc*nc, n_basis)
    }
    # labs = [ones(ipc)*i for i in range(num_classes)].view(-1)
    labs = jnp.repeat(jnp.arange(num_classes, dtype=jnp.int32), ipc)
    return params, labs


def net_forward(params, labs, key, *, ipc, channel, im_size, num_classes,
                n_basis, n_per_c, task_indices=None, combine=True,
                new_batch_size=None):
    """Mirrors Net.forward. Random index selection is made deterministic via `key`."""
    if task_indices is None:
        task_indices = list(range(num_classes))
    take = new_batch_size if new_batch_size is not None else n_per_c

    inds = []
    for i in task_indices:
        k = jax.random.fold_in(key, i)
        perm = jax.random.permutation(k, ipc)           # torch.randperm(ipc)
        ind = jnp.sort(perm[:take]) + ipc * i           # [:take].sort()[0] + ipc*i
        inds.append(ind)
    indices = jnp.concatenate(inds).astype(jnp.int32)

    labs_sel = jnp.take(labs, indices)

    if combine:
        n_sel = indices.shape[0]
        # Fused gather + matmul on the MXU (single Pallas launch).
        # Note: at toy sizes this call is launch-overhead bound; an XLA
        # take+dot fallback would be equally fast, but the Pallas path is
        # kept as the canonical implementation.
        imgs_flat = combine_basis_pallas(params["imgs"], params["basis"], indices)
        imgs = imgs_flat.reshape(n_sel, channel, im_size[0], im_size[1])  # NCHW
        return imgs, labs_sel, indices
    else:
        basis = params["basis"].reshape(n_basis, channel, im_size[0], im_size[1])
        coeffs = jnp.take(params["imgs"], indices, axis=0)
        return [basis, coeffs], labs_sel, indices


# --------------------------------- main ------------------------------------ #

if __name__ == "__main__":
    # Small, forward-consistent shapes.
    ipc = 4
    num_classes = 4
    channel = 3
    im_size = (16, 16)          # C*H*W = 768 (multiple of 128 -> no column pad)
    n_basis = 8
    n_per_c = 2                 # minibatch of coefficients per class -> N_sel = 8
    downsample_scale = 1        # im_size unchanged; interpolate only used outside forward()

    key = jax.random.PRNGKey(0)
    k_init, k_fwd = jax.random.split(key)
    params, labs = init_net(k_init, ipc, channel, im_size, num_classes, n_basis)

    imgs, labs_sel, indices = net_forward(
        params, labs, k_fwd,
        ipc=ipc, channel=channel, im_size=im_size, num_classes=num_classes,
        n_basis=n_basis, n_per_c=n_per_c, combine=True,
    )
    imgs = jax.block_until_ready(imgs)

    # Reference check against plain-JAX gather + combine_basis (all f32).
    coeffs_ref = jnp.take(params["imgs"], indices, axis=0)
    ref = (coeffs_ref @ params["basis"]).reshape(
        indices.shape[0], channel, im_size[0], im_size[1]
    )
    assert imgs.shape == (n_per_c * num_classes, channel, im_size[0], im_size[1])
    assert imgs.dtype == jnp.float32
    assert jnp.allclose(imgs, ref, atol=1e-5, rtol=1e-5)
    assert jnp.array_equal(labs_sel, jnp.take(labs, indices))

    print("KERNEL_OK")
</pallas_src>

<mosaic_0001>
module attributes {stable_mosaic.version = 11 : i64} {
  func.func @kernel(%arg0: i32, %arg1: memref<8x1xi32, #tpu.memory_space<vmem>>, %arg2: memref<16x8xf32, #tpu.memory_space<vmem>>, %arg3: memref<8x768xf32, #tpu.memory_space<vmem>>, %arg4: memref<8x768xf32, #tpu.memory_space<vmem>>) attributes {dimension_semantics = [#tpu.dimension_semantics<parallel>], iteration_bounds = array<i64: 1>, scalar_prefetch = 0 : i64, scratch_operands = 0 : i64, tpu.core_type = #tpu.core_type<tc>, window_params = [{pipeline_mode = #tpu.pipeline_mode<synchronous>, transform_indices = @transform_0, window_bounds = array<i64: 8, 1>}, {pipeline_mode = #tpu.pipeline_mode<synchronous>, transform_indices = @transform_1, window_bounds = array<i64: 16, 8>}, {transform_indices = @transform_2, window_bounds = array<i64: 8, 768>}, {transform_indices = @transform_3, window_bounds = array<i64: 8, 768>}]} {
    %0 = tpu.iota {dimensions = array<i32: 1>} : vector<8x16xi32>
    %c0 = arith.constant 0 : index
    %c0_0 = arith.constant 0 : index
    %1 = vector.load %arg1[%c0, %c0_0] : memref<8x1xi32, #tpu.memory_space<vmem>>, vector<8x1xi32>
    %2 = vector.broadcast %1 : vector<8x1xi32> to vector<8x16xi32>
    %3 = arith.cmpi eq, %2, %0 : vector<8x16xi32>
    %4 = arith.extui %3 : vector<8x16xi1> to vector<8x16xi32>
    %5 = arith.sitofp %4 : vector<8x16xi32> to vector<8x16xf32>
    %c0_1 = arith.constant 0 : index
    %c0_2 = arith.constant 0 : index
    %6 = vector.load %arg2[%c0_1, %c0_2] : memref<16x8xf32, #tpu.memory_space<vmem>>, vector<16x8xf32>
    %cst = arith.constant dense<0.000000e+00> : vector<8x8xf32>
    %7 = tpu.matmul %5, %6, %cst {dimension_numbers = #tpu.dot_dimension_numbers<[1], [0], [0], [1], [0, 0, 1, 1], [], []>} : vector<8x16xf32>, vector<16x8xf32>, vector<8x8xf32> -> vector<8x8xf32>
    %c0_3 = arith.constant 0 : index
    %c0_4 = arith.constant 0 : index
    %8 = vector.load %arg3[%c0_3, %c0_4] : memref<8x768xf32, #tpu.memory_space<vmem>>, vector<8x768xf32>
    %cst_5 = arith.constant dense<0.000000e+00> : vector<8x768xf32>
    %9 = tpu.matmul %7, %8, %cst_5 {dimension_numbers = #tpu.dot_dimension_numbers<[1], [0], [0], [1], [0, 0, 1, 1], [], []>} : vector<8x8xf32>, vector<8x768xf32>, vector<8x768xf32> -> vector<8x768xf32>
    %c0_6 = arith.constant 0 : index
    %c0_7 = arith.constant 0 : index
    %10 = vector.load %arg4[%c0_6, %c0_7] : memref<8x768xf32, #tpu.memory_space<vmem>>, vector<8x768xf32>
    tpu.vector_store %arg4[%c0_6, %c0_7], %9 {strides = array<i32>} : memref<8x768xf32, #tpu.memory_space<vmem>>, vector<8x768xf32>,
    return
  }
  func.func @transform_0(%arg0: i32) -> (i32, i32) {
    %c0_i32 = arith.constant 0 : i32
    %c0_i32_0 = arith.constant 0 : i32
    %c0_i32_1 = arith.constant 0 : i32
    return %c0_i32, %c0_i32_0 : i32, i32
  }
  func.func @transform_1(%arg0: i32) -> (i32, i32) {
    %c0_i32 = arith.constant 0 : i32
    %c0_i32_0 = arith.constant 0 : i32
    %c0_i32_1 = arith.constant 0 : i32
    return %c0_i32, %c0_i32_0 : i32, i32
  }
  func.func @transform_2(%arg0: i32) -> (i32, i32) {
    %c0_i32 = arith.constant 0 : i32
    %c0_i32_0 = arith.constant 0 : i32
    return %c0_i32, %arg0 : i32, i32
  }
  func.func @transform_3(%arg0: i32) -> (i32, i32) {
    %c0_i32 = arith.constant 0 : i32
    %c0_i32_0 = arith.constant 0 : i32
    return %c0_i32, %arg0 : i32, i32
  }
}

</mosaic_0001>

<bundles_post_ra>
// kernel: tpu_custom_call.1
= control target key start
LH: loop header
LB: loop body
LE: loop exit
PB: predicated region body
PF: predicated region fallthrough
CT: control target
= control target key end

     0   :  { %8 = vsyncpa [#allocation3], 0  ;;  %s488_s0 = inlined_call_operand.vmem [shape: s32[8,1], index: 0, kind: input, shape index: {}]   ;;  %s489_s1 = inlined_call_operand.vmem [shape: f32[16,8], index: 1, kind: input, shape index: {}]   ;;  %s490_s2 = inlined_call_operand.hbm [shape: f32[8,768], index: 2, kind: input, shape index: {}]   ;;  %s491_s3 = inlined_call_operand.hbm [shape: f32[8,768], index: 3, kind: output, shape index: {}]  }
   0x1   :  { %9 = vsyncpa [#allocation4], 0  ;;  %s429_s12 = smov [#allocation2]   ;;  %s381_s16 = scalar_lea.hbm %s490_s2, 768 }
   0x2   :  { %s20_s13 = sshll.u32 %s429_s12, 4  ;;  %p382_p0 = scmp.ne.s32.totalorder %s490_s2, %s381_s16  ;;  %s21_s13 = int_to_ptr.vmem [resolvable:$true] %s20_s13 }
   0x3   :  { %p385_p1 = scmp.lt.u32.totalorder %s381_s16, %s490_s2 }
   0x5   :  { %p387_p2 = pnand %p385_p1, %p382_p0 }
   0x7   :  { %390 = shalt.err (!%p387_p2)
}
   0x8   :  { %s391_s21 = scalar_lea.vmem %s21_s13, 768  ;;  %p396_p4 = scmp.lt.s32.totalorder %s21_s13, %s21_s13 }
   0x9   :  { %p392_p3 = scmp.ne.s32.totalorder %s21_s13, %s391_s21  ;;  %p397_p5 = scmp.lt.s32.totalorder %s391_s21, %s391_s21 }
   0xb   :  { %p398_p6 = por %p397_p5, %p396_p4 }
   0xd   :  { %p399_p7 = pnand %p398_p6, %p392_p3 }
   0xf   :  { %402 = shalt.err (!%p399_p7)
}
  0x10   :  { %23 = dma.hbm_to_vmem [thread:$0]  %s490_s2, 768, %s21_s13, [#allocation3]  }
  0x11   :  { %425 = dma.done.wait [#allocation3], 768  }
  0x12   :  { %426 = vsyncadd [#allocation3], 4294966528  ;;  %v430_v0 = vmov 0   ;;  %v431_v1 = vmov 0.0|0.0   ;;  %v432_v2 = vmov 0.0   ;;  %v29_v3 = vld [vmem:[%s488_s0] sm:$0xff]  ;;  %v27_v10 = vlaneseq }
  0x13   :  { %380 = vset.pattern.permute.xlu0 %v430_v0  ;;  %371 = vmatprep.subr.bf16.mxu0 %v431_v1  ;;  %v36_v4 = vld [vmem:[%s489_s1] sm:$0xff]  ;;  %v37_v5 = vld [vmem:[%s489_s1 + $0x8] sm:$0xff]  ;;  %vm433_vm0 = vmmov 0   ;;  %vm38_vm1 = vcmask 130048   ;;  %v115_v15 = vld [vmem:[#allocation2 + $0x18] sm:$0xff]  ;;  %vm118_vm3 = vcmask 64512  }
  0x14   :  { %186 = vmatprep.mubr.f32.mxu1 %v432_v2  ;;  %31 = vperm.xlu0 %380, %v29_v3   ;;  %v372_v6 = vpack.c.bf16 %v37_v5, %v36_v4  ;;  %v113_v7 = vld [vmem:[#allocation2 + $0x8] sm:$0xff]  ;;  %v112_v8 = vld [vmem:[#allocation2] sm:$0xff]  ;;  %v28_v11 = vand.u32 127, %v27_v10  ;;  %v114_v16 = vld [vmem:[#allocation2 + $0x10] sm:$0xff]  ;;  %s434_s0 = smov [#allocation5]  }
  0x15   :  { %368 = vmatprep.mubr.msk.f32.mxu0 %vm433_vm0, %v432_v2  ;;  %v117_v9 = vld [vmem:[#allocation2 + $0x28] sm:$0xff]  ;;  %122 = vmatprep.subr.mxu1 %v113_v7  ;;  %v116_v14 = vld [vmem:[#allocation2 + $0x20] sm:$0xff]  ;;  %s347_s1 = sshll.u32 %s434_s0, 4  ;;  %s348_s1 = int_to_ptr.vmem [resolvable:$true] %s347_s1 }
  0x16   :  { %373 = vmatpush3.bf16.msra.mxu0 %v372_v6  ;;  %123 = vmatpush1.msra.mxu1 %v112_v8  ;;  %s403_s2 = scalar_lea.vmem %s348_s1, 768  ;;  %p408_p9 = scmp.lt.s32.totalorder %s348_s1, %s348_s1 }
  0x17   :  { %264 = vmatprep.subr.mxu0 %v117_v9  ;;  %193 = vmatprep.subr.mxu1 %v115_v15  ;;  %p404_p8 = scmp.ne.s32.totalorder %s348_s1, %s403_s2  ;;  %p409_p10 = scmp.lt.s32.totalorder %s403_s2, %s403_s2 }
  0x19   :  { %p410_p11 = por %p409_p10, %p408_p9 }
  0x1b   :  { %p411_p12 = pnand %p410_p11, %p404_p8 }
  0x93   :  { %v32_v12 = vpop.permute.xlu0 %31 }
  0x94   :  { %vm33_vm2 = vcmp.eq.s32.totalorder %v32_v12, %v28_v11 }
  0x95   :  { %v356_v13 = vsel %vm33_vm2, 1.0, %v432_v2 }
  0x96   :  { %369 = vmatmul.mubr.msk.f32.vlgmr.msra.gmra.mrb[0].mxu0 %vm38_vm1, %v356_v13 }
  0x97   :  { %328 = vmatprep.mubr.f32.mxu0 %v432_v2  ;;  %265 = vmatpush1.msra.mxu0 %v116_v14 }
 0x169   :  { %v108_v17 = vpop.f32.mrb[0].mxu0 }
 0x16a   :  { %v370_v18 = vpop.f32.mrb[1].mxu0  ;;  %358 = vmatmul.mubr.msk.f32.vlgmr.msra.gmra.mrb[0].mxu1 %vm118_vm3, %v108_v17  ;;  %360 = vmatmul.mubr.msk.f32.vlgmr.msra.gmra.mrb[2].mxu0 %vm118_vm3, %v108_v17 }
 0x16b   :  { %194 = vmatpush1.msra.mxu1 %v114_v16  ;;  %257 = vmatprep.mubr.f32.mxu1 %v432_v2 }
 0x16e   :  { %359 = vmatmul.mubr.msk.f32.vlgmr.msra.gmra.mrb[2].mxu1 %vm118_vm3, %v108_v17 }
 0x23d   :  { %v188_v19 = vpop.f32.mrb[0].mxu1  ;;  %v330_v20 = vpop.f32.mrb[2].mxu0 }
 0x23e   :  { %335 = vst [vmem:[#allocation5] sm:$0xff] %v188_v19  ;;  %339 = vst [vmem:[#allocation5 + $0x20] sm:$0xff] %v330_v20  ;;  %v190_v21 = vpop.f32.mrb[1].mxu1  ;;  %v332_v22 = vpop.f32.mrb[3].mxu0 }
 0x23f   :  { %336 = vst [vmem:[#allocation5 + $0x8] sm:$0xff] %v190_v21  ;;  %340 = vst [vmem:[#allocation5 + $0x28] sm:$0xff] %v332_v22 }
 0x241   :  { %v259_v23 = vpop.f32.mrb[2].mxu1 }
 0x242   :  { %337 = vst [vmem:[#allocation5 + $0x10] sm:$0xff] %v259_v23  ;;  %v261_v24 = vpop.f32.mrb[3].mxu1 }
 0x243   :  { %338 = vst [vmem:[#allocation5 + $0x18] sm:$0xff] %v261_v24 }
 0x244   :  { %414 = shalt.err (!%p411_p12)
}
 0x245   :  { %s415_s5 = scalar_lea.hbm %s491_s3, 768 }
 0x246   :  { %p416_p13 = scmp.ne.s32.totalorder %s491_s3, %s415_s5  ;;  %p419_p0 = scmp.lt.u32.totalorder %s415_s5, %s491_s3 }
 0x248   :  { %p421_p1 = pnand %p419_p0, %p416_p13 }
 0x24a   :  { %424 = shalt.err (!%p421_p1)
}
 0x24b   :  { %350 = dma.vmem_to_hbm [thread:$0]  %s348_s1, 768, %s491_s3, [#allocation4]  }
 0x24c   :  { %427 = dma.done.wait [#allocation4], 768  }
 0x24d   :  { %428 = vsyncadd [#allocation4], 4294966528 }
 0x24e   :  { %354 = vsyncpa [#allocation3], 1 }
 0x24f   :  { %355 = vsyncpa [#allocation4], 1 }

</bundles_post_ra>
